<compile_context>
chip_gen: v7x
topology: tpu7x:2x2x1
jax: 0.10.0
libtpu: 0.0.40
codegen_flags: <defaults>
</compile_context>

<pallas_src>
import math

import jax
import jax.numpy as jnp
from jax.experimental import pallas as pl
from jax.experimental.pallas import tpu as pltpu

IN_FEATURES = 28 * 28   # 784
HIDDEN = 20
OUT_FEATURES = 10
DEFAULT_TB_MAX = 1024   # multiple of 8; fits default scoped VMEM on v5e/v6e/v7x


def _round_up(n, m):
    return ((n + m - 1) // m) * m


def _choose_tb(batch, tb_max=DEFAULT_TB_MAX):
    """Batch tile: multiple of 8, capped at tb_max, and (when batch > 8)
    producing an even number (>=2) of tiles so v7x's two TensorCores both get
    balanced work. No-op concern on v5e/v6e (single TensorCore)."""
    tb_max = max(8, (tb_max // 8) * 8)
    if batch <= 8:
        return 8
    n_tiles = max(2, pl.cdiv(batch, tb_max))
    if n_tiles % 2:          # balance tiles across the two v7x cores
        n_tiles += 1
    return max(8, _round_up(pl.cdiv(batch, n_tiles), 8))


def net_kernel(x_ref, w1_ref, b1_ref, w2_ref, b2_ref, o_ref):
    # One batch tile per grid step:
    #   h = relu(x @ W1 + b1)   (TB, 20)  -- bf16 inputs, f32 MXU accumulation
    #   o = h @ W2 + b2         (TB, 10)
    h = jnp.dot(x_ref[...], w1_ref[...], preferred_element_type=jnp.float32)
    h = jnp.maximum(h + b1_ref[...], 0.0)                 # ReLU
    o = jnp.dot(h, w2_ref[...], preferred_element_type=jnp.float32) + b2_ref[...]
    o_ref[...] = o.astype(o_ref.dtype)


def net_forward(x, w1, b1, w2, b2, *, tb_max=DEFAULT_TB_MAX):
    """x: (B, 784); returns (B, 10) float32.

    For best performance feed x already as bfloat16 (it is the dominant HBM
    stream); other dtypes are cast here as a fallback.
    """
    if x.dtype != jnp.bfloat16:
        # TODO(synk): have the producer emit bf16 directly instead of casting per call.
        x = x.astype(jnp.bfloat16)
    B = x.shape[0]
    tb = _choose_tb(B, tb_max)
    n_tiles = pl.cdiv(B, tb)

    flops = 2 * B * (IN_FEATURES * HIDDEN + HIDDEN * OUT_FEATURES)
    bytes_accessed = (B * IN_FEATURES * 2                 # stream x (bf16)
                      + B * OUT_FEATURES * 4              # store output (f32)
                      + IN_FEATURES * HIDDEN * 2 + HIDDEN * 4        # W1 bf16 + b1
                      + HIDDEN * OUT_FEATURES * 4 + OUT_FEATURES * 4)  # W2 + b2

    return pl.pallas_call(
        net_kernel,
        out_shape=jax.ShapeDtypeStruct((B, OUT_FEATURES), jnp.float32),
        grid=(n_tiles,),
        in_specs=[
            pl.BlockSpec((tb, IN_FEATURES), lambda i: (i, 0)),       # x tile (streamed)
            pl.BlockSpec((IN_FEATURES, HIDDEN), lambda i: (0, 0)),   # W1 resident
            pl.BlockSpec((1, HIDDEN), lambda i: (0, 0)),             # b1 resident
            pl.BlockSpec((HIDDEN, OUT_FEATURES), lambda i: (0, 0)),  # W2 resident
            pl.BlockSpec((1, OUT_FEATURES), lambda i: (0, 0)),       # b2 resident
        ],
        out_specs=pl.BlockSpec((tb, OUT_FEATURES), lambda i: (i, 0)),
        compiler_params=pltpu.CompilerParams(
            dimension_semantics=("parallel",)),   # megacore sharding on v7x
        cost_estimate=pl.CostEstimate(
            flops=flops, transcendentals=0, bytes_accessed=bytes_accessed),
    )(x, w1, b1, w2, b2)


def init_params(key):
    """Deterministic init mimicking PyTorch's nn.Linear default
    (uniform(-1/sqrt(fan_in), 1/sqrt(fan_in))). Stored as (in, out) so the
    kernel computes x @ W."""
    k1, k2, k3, k4 = jax.random.split(key, 4)
    bound1 = 1.0 / math.sqrt(IN_FEATURES)
    bound2 = 1.0 / math.sqrt(HIDDEN)
    w1 = jax.random.uniform(k1, (IN_FEATURES, HIDDEN), jnp.float32,
                            minval=-bound1, maxval=bound1)
    b1 = jax.random.uniform(k2, (1, HIDDEN), jnp.float32,
                            minval=-bound1, maxval=bound1)
    w2 = jax.random.uniform(k3, (HIDDEN, OUT_FEATURES), jnp.float32,
                            minval=-bound2, maxval=bound2)
    b2 = jax.random.uniform(k4, (1, OUT_FEATURES), jnp.float32,
                            minval=-bound2, maxval=bound2)
    return w1, b1, w2, b2


def prepare_params(w1, b1, w2, b2):
    """One-time prep (outside the hot path): cast the large W1 to bf16 to
    halve its HBM footprint; keep biases and the tiny W2 in f32."""
    return (w1.astype(jnp.bfloat16),
            b1.reshape(1, HIDDEN).astype(jnp.float32),
            w2.astype(jnp.float32),
            b2.reshape(1, OUT_FEATURES).astype(jnp.float32))


def reference_forward(x, w1, b1, w2, b2):
    """Pure-JAX reference mirroring the kernel's numerics
    (bf16-rounded x / W1, f32 accumulation)."""
    xb = x.astype(jnp.bfloat16).astype(jnp.float32)
    w1b = w1.astype(jnp.bfloat16).astype(jnp.float32)
    h = jnp.maximum(
        jnp.dot(xb, w1b, precision=jax.lax.Precision.HIGHEST) + b1, 0.0)
    return jnp.dot(h, w2, precision=jax.lax.Precision.HIGHEST) + b2


if __name__ == "__main__":
    key = jax.random.PRNGKey(0)
    kx, kp = jax.random.split(key)
    w1, b1, w2, b2 = init_params(kp)
    w1p, b1p, w2p, b2p = prepare_params(w1, b1, w2, b2)   # hoisted, once

    # 1) Single-tile check (B=8). x cast to bf16 "upstream", once.
    B = 8
    x_f32 = jax.random.normal(kx, (B, IN_FEATURES), dtype=jnp.float32)
    out = jax.block_until_ready(
        net_forward(x_f32.astype(jnp.bfloat16), w1p, b1p, w2p, b2p))
    ref = reference_forward(x_f32, w1, b1, w2, b2)
    assert out.shape == (B, OUT_FEATURES)
    assert jnp.allclose(out, ref, atol=1e-3, rtol=1e-3), "mismatch (single tile)"

    # 2) Ragged multi-tile check, no wrapper padding (B=20, tb_max=8 -> 3 grid
    #    steps, partial last block masked by Pallas).
    B2 = 20
    x2_f32 = jax.random.normal(jax.random.PRNGKey(1), (B2, IN_FEATURES),
                               dtype=jnp.float32)
    out2 = jax.block_until_ready(
        net_forward(x2_f32.astype(jnp.bfloat16), w1p, b1p, w2p, b2p, tb_max=8))
    ref2 = reference_forward(x2_f32, w1, b1, w2, b2)
    assert out2.shape == (B2, OUT_FEATURES)
    assert jnp.allclose(out2, ref2, atol=1e-3, rtol=1e-3), "mismatch (ragged tiles)"

    # 3) Default tiling check (B=300 -> 2 balanced tiles, ragged last tile).
    B3 = 300
    x3_f32 = jax.random.normal(jax.random.PRNGKey(2), (B3, IN_FEATURES),
                               dtype=jnp.float32)
    out3 = jax.block_until_ready(
        net_forward(x3_f32.astype(jnp.bfloat16), w1p, b1p, w2p, b2p))
    ref3 = reference_forward(x3_f32, w1, b1, w2, b2)
    assert out3.shape == (B3, OUT_FEATURES)
    assert jnp.allclose(out3, ref3, atol=1e-3, rtol=1e-3), "mismatch (default tiling)"

    print("KERNEL_OK")
</pallas_src>

<mosaic_0001>
module attributes {stable_mosaic.version = 11 : i64} {
  func.func @net_kernel(%arg0: i32, %arg1: memref<8x784xbf16, #tpu.memory_space<vmem>>, %arg2: memref<784x20xbf16, #tpu.memory_space<vmem>>, %arg3: memref<1x20xf32, #tpu.memory_space<vmem>>, %arg4: memref<20x10xf32, #tpu.memory_space<vmem>>, %arg5: memref<1x10xf32, #tpu.memory_space<vmem>>, %arg6: memref<8x10xf32, #tpu.memory_space<vmem>>) attributes {dimension_semantics = [#tpu.dimension_semantics<parallel>], iteration_bounds = array<i64: 1>, scalar_prefetch = 0 : i64, scratch_operands = 0 : i64, tpu.core_type = #tpu.core_type<tc>, window_params = [{transform_indices = @transform_0, window_bounds = array<i64: 8, 784>}, {pipeline_mode = #tpu.pipeline_mode<synchronous>, transform_indices = @transform_1, window_bounds = array<i64: 784, 20>}, {pipeline_mode = #tpu.pipeline_mode<synchronous>, transform_indices = @transform_2, window_bounds = array<i64: 1, 20>}, {pipeline_mode = #tpu.pipeline_mode<synchronous>, transform_indices = @transform_3, window_bounds = array<i64: 20, 10>}, {pipeline_mode = #tpu.pipeline_mode<synchronous>, transform_indices = @transform_4, window_bounds = array<i64: 1, 10>}, {transform_indices = @transform_5, window_bounds = array<i64: 8, 10>}]} {
    %c0 = arith.constant 0 : index
    %c0_0 = arith.constant 0 : index
    %0 = vector.load %arg1[%c0, %c0_0] : memref<8x784xbf16, #tpu.memory_space<vmem>>, vector<8x784xbf16>
    %c0_1 = arith.constant 0 : index
    %c0_2 = arith.constant 0 : index
    %1 = vector.load %arg2[%c0_1, %c0_2] : memref<784x20xbf16, #tpu.memory_space<vmem>>, vector<784x20xbf16>
    %cst = arith.constant dense<0.000000e+00> : vector<8x20xf32>
    %2 = tpu.matmul %0, %1, %cst {dimension_numbers = #tpu.dot_dimension_numbers<[1], [0], [0], [1], [0, 0, 1, 1], [], []>} : vector<8x784xbf16>, vector<784x20xbf16>, vector<8x20xf32> -> vector<8x20xf32>
    %c0_3 = arith.constant 0 : index
    %c0_4 = arith.constant 0 : index
    %3 = vector.load %arg3[%c0_3, %c0_4] : memref<1x20xf32, #tpu.memory_space<vmem>>, vector<1x20xf32>
    %4 = vector.broadcast %3 : vector<1x20xf32> to vector<8x20xf32>
    %5 = arith.addf %2, %4 : vector<8x20xf32>
    %cst_5 = arith.constant 0.000000e+00 : f32
    %6 = vector.broadcast %cst_5 : f32 to vector<8x20xf32>
    %7 = arith.maximumf %5, %6 : vector<8x20xf32>
    %c0_6 = arith.constant 0 : index
    %c0_7 = arith.constant 0 : index
    %8 = vector.load %arg4[%c0_6, %c0_7] : memref<20x10xf32, #tpu.memory_space<vmem>>, vector<20x10xf32>
    %cst_8 = arith.constant dense<0.000000e+00> : vector<8x10xf32>
    %9 = tpu.matmul %7, %8, %cst_8 {dimension_numbers = #tpu.dot_dimension_numbers<[1], [0], [0], [1], [0, 0, 1, 1], [], []>} : vector<8x20xf32>, vector<20x10xf32>, vector<8x10xf32> -> vector<8x10xf32>
    %c0_9 = arith.constant 0 : index
    %c0_10 = arith.constant 0 : index
    %10 = vector.load %arg5[%c0_9, %c0_10] : memref<1x10xf32, #tpu.memory_space<vmem>>, vector<1x10xf32>
    %11 = vector.broadcast %10 : vector<1x10xf32> to vector<8x10xf32>
    %12 = arith.addf %9, %11 : vector<8x10xf32>
    %c0_11 = arith.constant 0 : index
    %c0_12 = arith.constant 0 : index
    %13 = vector.load %arg6[%c0_11, %c0_12] : memref<8x10xf32, #tpu.memory_space<vmem>>, vector<8x10xf32>
    tpu.vector_store %arg6[%c0_11, %c0_12], %12 {strides = array<i32>} : memref<8x10xf32, #tpu.memory_space<vmem>>, vector<8x10xf32>,
    return
  }
  func.func @transform_0(%arg0: i32) -> (i32, i32) {
    %c0_i32 = arith.constant 0 : i32
    %c0_i32_0 = arith.constant 0 : i32
    return %arg0, %c0_i32 : i32, i32
  }
  func.func @transform_1(%arg0: i32) -> (i32, i32) {
    %c0_i32 = arith.constant 0 : i32
    %c0_i32_0 = arith.constant 0 : i32
    %c0_i32_1 = arith.constant 0 : i32
    return %c0_i32, %c0_i32_0 : i32, i32
  }
  func.func @transform_2(%arg0: i32) -> (i32, i32) {
    %c0_i32 = arith.constant 0 : i32
    %c0_i32_0 = arith.constant 0 : i32
    %c0_i32_1 = arith.constant 0 : i32
    return %c0_i32, %c0_i32_0 : i32, i32
  }
  func.func @transform_3(%arg0: i32) -> (i32, i32) {
    %c0_i32 = arith.constant 0 : i32
    %c0_i32_0 = arith.constant 0 : i32
    %c0_i32_1 = arith.constant 0 : i32
    return %c0_i32, %c0_i32_0 : i32, i32
  }
  func.func @transform_4(%arg0: i32) -> (i32, i32) {
    %c0_i32 = arith.constant 0 : i32
    %c0_i32_0 = arith.constant 0 : i32
    %c0_i32_1 = arith.constant 0 : i32
    return %c0_i32, %c0_i32_0 : i32, i32
  }
  func.func @transform_5(%arg0: i32) -> (i32, i32) {
    %c0_i32 = arith.constant 0 : i32
    %c0_i32_0 = arith.constant 0 : i32
    return %arg0, %c0_i32 : i32, i32
  }
}

</mosaic_0001>

<bundles_post_ra>
// kernel: tpu_custom_call.1
= control target key start
LH: loop header
LB: loop body
LE: loop exit
PB: predicated region body
PF: predicated region fallthrough
CT: control target
= control target key end

     0   :  { %v953_v43 = vmov 0.0   ;;  %vm954_vm0 = vmmov 0   ;;  %s1175_s0 = inlined_call_operand.vmem [shape: bf16[8,784], index: 0, kind: input, shape index: {}]   ;;  %s1176_s1 = inlined_call_operand.vmem [shape: bf16[784,20], index: 1, kind: input, shape index: {}]   ;;  %s1177_s2 = inlined_call_operand.vmem [shape: f32[1,20], index: 2, kind: input, shape index: {}]   ;;  %s1178_s3 = inlined_call_operand.vmem [shape: f32[20,10], index: 3, kind: input, shape index: {}]   ;;  %s1179_s4 = inlined_call_operand.vmem [shape: f32[1,10], index: 4, kind: input, shape index: {}]   ;;  %s1180_s5 = inlined_call_operand.hbm [shape: f32[8,10], index: 5, kind: output, shape index: {}]  }
   0x1   :  { %v873_v0 = vld [vmem:[%s1176_s1 + $0x40] sm:$0xff]   ;;  %v877_v4 = vld [vmem:[%s1176_s1 + $0x48] sm:$0xff]   ;;  %v881_v8 = vld [vmem:[%s1176_s1 + $0x50] sm:$0xff]  }
   0x2   :  { %v874_v1 = vld [vmem:[%s1176_s1] sm:$0xff]   ;;  %779 = vmatprep.subr.bf16.mxu0 %v873_v0  ;;  %v878_v5 = vld [vmem:[%s1176_s1 + $0x8] sm:$0xff]   ;;  %v882_v9 = vld [vmem:[%s1176_s1 + $0x10] sm:$0xff]  }
   0x3   :  { %v875_v2 = vld [vmem:[%s1176_s1 + $0xc0] sm:$0xff]   ;;  %780 = vmatpush3.bf16.msra.mxu0 %v874_v1  ;;  %v879_v6 = vld [vmem:[%s1176_s1 + $0xc8] sm:$0xff]   ;;  %v883_v10 = vld [vmem:[%s1176_s1 + $0xd0] sm:$0xff]  }
   0x4   :  { %v876_v3 = vld [vmem:[%s1176_s1 + $0x80] sm:$0xff]   ;;  %801 = vmatprep.subr.bf16.mxu1 %v875_v2  ;;  %781 = vmatprep.subr.bf16.mxu0 %v877_v4  ;;  %v880_v7 = vld [vmem:[%s1176_s1 + $0x88] sm:$0xff]   ;;  %v884_v11 = vld [vmem:[%s1176_s1 + $0x90] sm:$0xff]  }
   0x5   :  { %802 = vmatpush3.bf16.msra.mxu1 %v876_v3  ;;  %v885_v12 = vld [vmem:[%s1176_s1 + $0x58] sm:$0xff]   ;;  %v889_v16 = vld [vmem:[%s1176_s1 + $0x60] sm:$0xff]   ;;  %v893_v20 = vld [vmem:[%s1176_s1 + $0x68] sm:$0xff]  }
   0x6   :  { %803 = vmatprep.subr.bf16.mxu1 %v879_v6  ;;  %v886_v13 = vld [vmem:[%s1176_s1 + $0x18] sm:$0xff]   ;;  %v890_v17 = vld [vmem:[%s1176_s1 + $0x20] sm:$0xff]   ;;  %v894_v21 = vld [vmem:[%s1176_s1 + $0x28] sm:$0xff]  }
   0x7   :  { %782 = vmatpush3.bf16.msra.mxu0 %v878_v5  ;;  %v887_v14 = vld [vmem:[%s1176_s1 + $0xd8] sm:$0xff]   ;;  %v891_v18 = vld [vmem:[%s1176_s1 + $0xe0] sm:$0xff]   ;;  %v895_v22 = vld [vmem:[%s1176_s1 + $0xe8] sm:$0xff]  }
   0x8   :  { %783 = vmatprep.subr.bf16.mxu0 %v881_v8  ;;  %v888_v15 = vld [vmem:[%s1176_s1 + $0x98] sm:$0xff]   ;;  %v892_v19 = vld [vmem:[%s1176_s1 + $0xa0] sm:$0xff]   ;;  %v896_v23 = vld [vmem:[%s1176_s1 + $0xa8] sm:$0xff]  }
   0x9   :  { %804 = vmatpush3.bf16.msra.mxu1 %v880_v7  ;;  %v897_v24 = vld [vmem:[%s1176_s1 + $0x70] sm:$0xff]   ;;  %v901_v28 = vld [vmem:[%s1176_s1 + $0x78] sm:$0xff]   ;;  %v22_v31 = vld [vmem:[%s1175_s0] sm:$0xff] }
   0xa   :  { %805 = vmatprep.subr.bf16.mxu1 %v883_v10  ;;  %v898_v25 = vld [vmem:[%s1176_s1 + $0x30] sm:$0xff]   ;;  %v902_v29 = vld [vmem:[%s1176_s1 + $0x38] sm:$0xff]   ;;  %v719_v32 = vcombine.low %v22_v31, %v22_v31  ;;  %v720_v33 = vcombine.high %v22_v31, %v22_v31  ;;  %v907_v35 = vld [vmem:[%s1176_s1 + $0x140] sm:$0xff]  }
   0xb   :  { %784 = vmatpush3.bf16.msra.mxu0 %v882_v9  ;;  %v899_v26 = vld [vmem:[%s1176_s1 + $0xf0] sm:$0xff]   ;;  %v903_v30 = vld [vmem:[%s1176_s1 + $0xf8] sm:$0xff]   ;;  %v23_v36 = vld [vmem:[%s1175_s0 + $0x8] sm:$0xff] }
   0xc   :  { %785 = vmatprep.subr.bf16.mxu0 %v885_v12  ;;  %v900_v27 = vld [vmem:[%s1176_s1 + $0xb0] sm:$0xff]   ;;  %v906_v34 = vld [vmem:[%s1176_s1 + $0xb8] sm:$0xff]   ;;  %485 = vmatprep.mubr.bf16.mxu0 %v720_v33  ;;  %v721_v37 = vcombine.low %v23_v36, %v23_v36  ;;  %v722_v38 = vcombine.high %v23_v36, %v23_v36  ;;  %v910_v39 = vld [vmem:[%s1176_s1 + $0x100] sm:$0xff]  }
   0xd   :  { %806 = vmatpush3.bf16.msra.mxu1 %v884_v11  ;;  %v911_v40 = vld [vmem:[%s1176_s1 + $0x148] sm:$0xff]   ;;  %v913_v42 = vld [vmem:[%s1176_s1 + $0x150] sm:$0xff]   ;;  %v915_v45 = vld [vmem:[%s1176_s1 + $0x158] sm:$0xff]  }
   0xe   :  { %807 = vmatprep.subr.bf16.mxu1 %v887_v14  ;;  %525 = vmatprep.mubr.bf16.mxu1 %v722_v38  ;;  %v912_v41 = vld [vmem:[%s1176_s1 + $0x108] sm:$0xff]   ;;  %v914_v44 = vld [vmem:[%s1176_s1 + $0x110] sm:$0xff]   ;;  %v916_v46 = vld [vmem:[%s1176_s1 + $0x118] sm:$0xff]  }
   0xf   :  { %786 = vmatpush3.bf16.msra.mxu0 %v886_v13  ;;  %v917_v47 = vld [vmem:[%s1176_s1 + $0x160] sm:$0xff]   ;;  %v919_v49 = vld [vmem:[%s1176_s1 + $0x168] sm:$0xff]   ;;  %v24_v51 = vld [vmem:[%s1175_s0 + $0x10] sm:$0xff] }
  0x10   :  { %787 = vmatprep.subr.bf16.mxu0 %v889_v16  ;;  %v918_v48 = vld [vmem:[%s1176_s1 + $0x120] sm:$0xff]   ;;  %v724_v52 = vcombine.high %v24_v51, %v24_v51  ;;  %v928_v53 = vld [vmem:[%s1175_s0 + $0x18] ss:$0 sps:$4 sm:$0xff]  }
  0x11   :  { %808 = vmatpush3.bf16.msra.mxu1 %v888_v15  ;;  %v925_v50 = vld [vmem:[%s1176_s1 + $0x180] sm:$0xff]  }
  0x12   :  { %809 = vmatprep.subr.bf16.mxu1 %v891_v18 }
  0x13   :  { %788 = vmatpush3.bf16.msra.mxu0 %v890_v17 }
  0x14   :  { %789 = vmatprep.subr.bf16.mxu0 %v893_v20 }
  0x15   :  { %810 = vmatpush3.bf16.msra.mxu1 %v892_v19 }
  0x16   :  { %811 = vmatprep.subr.bf16.mxu1 %v895_v22 }
  0x17   :  { %790 = vmatpush3.bf16.msra.mxu0 %v894_v21 }
  0x18   :  { %791 = vmatprep.subr.bf16.mxu0 %v897_v24 }
  0x19   :  { %812 = vmatpush3.bf16.msra.mxu1 %v896_v23 }
  0x1a   :  { %813 = vmatprep.subr.bf16.mxu1 %v899_v26 }
  0x1b   :  { %792 = vmatpush3.bf16.msra.mxu0 %v898_v25 }
  0x1c   :  { %793 = vmatprep.subr.bf16.mxu0 %v901_v28 }
  0x1d   :  { %814 = vmatpush3.bf16.msra.mxu1 %v900_v27 }
  0x1e   :  { %815 = vmatprep.subr.bf16.mxu1 %v903_v30 }
  0x1f   :  { %794 = vmatpush3.bf16.msra.mxu0 %v902_v29 }
  0x20   :  { %823 = vmatprep.subr.bf16.mxu0 %v907_v35 }
  0x21   :  { %816 = vmatpush3.bf16.msra.mxu1 %v906_v34 }
  0x22   :  { %486 = vmatmul.mubr.bf16.vlgmr.msra.gmra.mrb[0].mxu0 %v719_v32  ;;  %851 = vmatprep.subr.bf16.mxu1 %v953_v43 }
  0x23   :  { %824 = vmatpush3.bf16.msra.mxu0 %v910_v39 }
  0x24   :  { %526 = vmatmul.mubr.bf16.vlgmr.msra.gmra.mrb[0].mxu1 %v721_v37  ;;  %825 = vmatprep.subr.bf16.mxu0 %v911_v40 }
  0x25   :  { %853 = vmatprep.mubr.msk.bf16.mxu1 %vm954_vm0, %v953_v43 }
  0x27   :  { %826 = vmatpush3.bf16.msra.mxu0 %v912_v41 }
  0x28   :  { %827 = vmatprep.subr.bf16.mxu0 %v913_v42 }
  0x2b   :  { %828 = vmatpush3.bf16.msra.mxu0 %v914_v44 }
  0x2c   :  { %829 = vmatprep.subr.bf16.mxu0 %v915_v45 }
  0x2f   :  { %830 = vmatpush3.bf16.msra.mxu0 %v916_v46 }
  0x30   :  { %831 = vmatprep.subr.bf16.mxu0 %v917_v47 }
  0x31   :  { %10 = vsyncpa [#allocation3], 0  ;;  %852 = vmatpush3.bf16.msra.mxu1 %v925_v50  ;;  %vm449_vm1 = vcmask 130048   ;;  %v920_v54 = vld [vmem:[%s1176_s1 + $0x128] sm:$0xff]   ;;  %565 = vmatprep.mubr.bf16.mxu0 %v724_v52  ;;  %v921_v55 = vld [vmem:[%s1176_s1 + $0x170] sm:$0xff]   ;;  %v723_v59 = vcombine.low %v24_v51, %v24_v51  ;;  %v955_v62 = vmov 0.0|0.0  }
  0x32   :  { %v922_v56 = vld [vmem:[%s1176_s1 + $0x130] sm:$0xff]   ;;  %v923_v57 = vld [vmem:[%s1176_s1 + $0x178] sm:$0xff]   ;;  %v614_v60 = vld [vmem:[%s1178_s3] sm:$0xff]  ;;  %866 = vmatprep.subr.bf16.mxu1 %v955_v62  ;;  %vm628_vm2 = vcmask 1043456   ;;  %vm624_vm3 = vcmask 162816   ;;  %s956_s30 = smov [#allocation2]  }
  0x33   :  { %832 = vmatpush3.bf16.msra.mxu0 %v918_v48  ;;  %v924_v58 = vld [vmem:[%s1176_s1 + $0x138] sm:$0xff]   ;;  %v615_v61 = vld [vmem:[%s1178_s3 + $0x8] sm:$0xff]  ;;  %v616_v0 = vld [vmem:[%s1178_s3 + $0x10] sm:$0xf]  ;;  %s710_s6 = sshll.u32 %s956_s30, 4  ;;  %vm702_vm4 = vcmask 80896   ;;  %s711_s6 = int_to_ptr.vmem [resolvable:$true] %s710_s6 }
  0x34   :  { %833 = vmatprep.subr.bf16.mxu0 %v919_v49  ;;  %854 = vmatmul.mubr.msk.bf16.vlgmr.msra.gmra.mrb[4].mxu1 %vm449_vm1, %v928_v53  ;;  %v867_v63 = vpack.c.bf16 %v615_v61, %v614_v60  ;;  %v718_v2 = vld [vmem:[%s1177_s2] ss:$0 sm:$0xff]  ;;  %s929_s7 = scalar_lea.vmem %s711_s6, 128  ;;  %p934_p1 = scmp.lt.s32.totalorder %s711_s6, %s711_s6 }
  0x35   :  { %863 = vmatprep.mubr.msk.f32.mxu1 %vm954_vm0, %v953_v43  ;;  %v776_v26 = vld [vmem:[%s1179_s4] ss:$0 sm:$0xff]  ;;  %p930_p0 = scmp.ne.s32.totalorder %s711_s6, %s929_s7  ;;  %p935_p2 = scmp.lt.s32.totalorder %s929_s7, %s929_s7 }
  0x36   :  { %868 = vmatpush3.bf16.msra.mxu1 %v867_v63 }
  0x37   :  { %834 = vmatpush3.bf16.msra.mxu0 %v920_v54  ;;  %861 = vmatprep.subr.mxu1 %v953_v43  ;;  %p936_p3 = por %p935_p2, %p934_p1 }
  0x38   :  { %835 = vmatprep.subr.bf16.mxu0 %v921_v55 }
  0x39   :  { %p937_p4 = pnand %p936_p3, %p930_p0 }
  0x3a   :  { %862 = vmatpush3.msk.msra.mxu1 %vm628_vm2, %v616_v0 }
  0x3b   :  { %836 = vmatpush3.bf16.msra.mxu0 %v922_v56 }
  0x3c   :  { %837 = vmatprep.subr.bf16.mxu0 %v923_v57 }
  0x3f   :  { %838 = vmatpush3.bf16.msra.mxu0 %v924_v58 }
  0x42   :  { %566 = vmatmul.mubr.bf16.vlgmr.msra.gmra.mrb[4].mxu0 %v723_v59 }
  0xf5   :  { %v795_v1 = vpop.f32.mrb[0].mxu0 }
  0xf6   :  { %v796_v3 = vpop.f32.mrb[1].mxu0 }
  0xf7   :  { %v797_v4 = vadd.f32 %v796_v3, %v795_v1  ;;  %v798_v5 = vpop.f32.mrb[2].mxu0  ;;  %v817_v6 = vpop.f32.mrb[0].mxu1 }
  0xf8   :  { %v799_v7 = vpop.f32.mrb[3].mxu0  ;;  %v818_v8 = vpop.f32.mrb[1].mxu1 }
  0xf9   :  { %v488_v9 = vadd.f32 %v797_v4, %v718_v2  ;;  %v819_v10 = vadd.f32 %v818_v8, %v817_v6  ;;  %v820_v11 = vpop.f32.mrb[2].mxu1 }
  0xfa   :  { %v821_v12 = vpop.f32.mrb[3].mxu1 }
  0xfb   :  { %v528_v13 = vadd.f32 %v819_v10, %v488_v9 }
 0x107   :  { %v607_v14 = vpop.f32.mrb[4].mxu1 }
 0x108   :  { %v855_v15 = vpop.f32.mrb[5].mxu1 }
 0x109   :  { %v610_v16 = vpop.f32.mrb[6].mxu1 }
 0x10a   :  { %v856_v17 = vpop.f32.mrb[7].mxu1 }
 0x115   :  { %v839_v18 = vpop.f32.mrb[4].mxu0 }
 0x116   :  { %v840_v19 = vpop.f32.mrb[5].mxu0 }
 0x117   :  { %v841_v20 = vadd.f32 %v840_v19, %v839_v18  ;;  %v842_v21 = vpop.f32.mrb[6].mxu0 }
 0x118   :  { %v843_v22 = vpop.f32.mrb[7].mxu0 }
 0x119   :  { %v568_v23 = vadd.f32 %v841_v20, %v528_v13 }
 0x11b   :  { %v608_v24 = vadd.f32 %v607_v14, %v568_v23 }
 0x11d   :  { %v613_v25 = vmax.f32 %v608_v24, 0.0 }
 0x11f   :  { %864 = vmatmul.mubr.msk.f32.vlgmr.msra.gmra.mrb[8].mxu1 %vm624_vm3, %v613_v25 }
 0x1f2   :  { %v698_v27 = vpop.f32.mrb[8].mxu1 }
 0x1f3   :  { %v699_v28 = vadd.f32 %v776_v26, %v698_v27  ;;  %v865_v29 = vpop.f32.mrb[9].mxu1 }
 0x1f5   :  { %703 = vst.msk [vmem:[#allocation2] sm:$0xff] %vm702_vm4, %v699_v28 }
 0x1f6   :  { %940 = shalt.err (!%p937_p4)
}
 0x1f7   :  { %s941_s10 = scalar_lea.hbm %s1180_s5, 128 }
 0x1f8   :  { %p942_p5 = scmp.ne.s32.totalorder %s1180_s5, %s941_s10  ;;  %p945_p6 = scmp.lt.u32.totalorder %s941_s10, %s1180_s5 }
 0x1fa   :  { %p947_p7 = pnand %p945_p6, %p942_p5 }
 0x1fc   :  { %950 = shalt.err (!%p947_p7)
}
 0x1fd   :  { %713 = dma.vmem_to_hbm [thread:$0]  %s711_s6, 128, %s1180_s5, [#allocation3]  }
 0x1fe   :  { %951 = dma.done.wait [#allocation3], 128  }
 0x1ff   :  { %952 = vsyncadd [#allocation3], 4294967168 }
 0x200   :  { %717 = vsyncpa [#allocation3], 1 }

</bundles_post_ra>
